<compile_context>
chip_gen: v5e
topology: v5e:2x2
jax: 0.10.0
libtpu: 0.0.40
codegen_flags: <defaults>
</compile_context>

<pallas_src>
import jax
import jax.numpy as jnp
from jax.experimental import pallas as pl
from jax.experimental.pallas import tpu as pltpu


# --------------------------------------------------------------------------- utils
def _round_up(x, m):
    return ((x + m - 1) // m) * m


def _largest_tile(dim, target, unit):
    """Largest multiple of `unit` that divides `dim` and is <= max(target, unit).

    `dim` is always a multiple of `unit`, so this terminates (worst case = unit).
    """
    t = max(unit, min(target, dim))
    t = (t // unit) * unit
    while dim % t != 0:
        t -= unit
    return t


# --------------------------------------------------------------------------- kernels
def _small_linear_relu_kernel(x_ref, w_ref, b_ref, o_ref):
    """Single-shot kernel for tiny layers: full arrays live in VMEM, one launch.

    x: (M, K), w: (N, K) [PyTorch layout, contracted on its last dim], b: (1, N).
    """
    acc = jax.lax.dot_general(
        x_ref[...], w_ref[...],
        dimension_numbers=(((1,), (1,)), ((), ())),      # x.K contracted with w.K
        preferred_element_type=jnp.float32)
    acc = acc + b_ref[...].astype(jnp.float32)
    o_ref[...] = jnp.maximum(acc, 0.0).astype(o_ref.dtype)


def _linear_relu_kernel_k_collapsed(x_ref, w_ref, b_ref, o_ref):
    """K fully resident: one MXU pass per output tile, bias+ReLU fused, no scratch."""
    x = x_ref[...]
    w = w_ref[...]
    if x.dtype != w.dtype:            # optional bf16 weights -> run the MXU in bf16
        x = x.astype(w.dtype)
    acc = jnp.dot(x, w, preferred_element_type=jnp.float32)
    acc = acc + b_ref[...].astype(jnp.float32)
    o_ref[...] = jnp.maximum(acc, 0.0).astype(o_ref.dtype)


def _linear_relu_kernel_k_grid(x_ref, w_ref, b_ref, o_ref):
    """K tiled on the grid: the f32 output block itself is the accumulator
    (its block index is constant over k), so no separate VMEM scratch is needed."""
    k = pl.program_id(2)

    @pl.when(k == 0)
    def _():
        o_ref[...] = jnp.zeros_like(o_ref)

    x = x_ref[...]
    w = w_ref[...]
    if x.dtype != w.dtype:
        x = x.astype(w.dtype)
    o_ref[...] += jnp.dot(x, w, preferred_element_type=jnp.float32)

    @pl.when(k == pl.num_programs(2) - 1)
    def _():
        o_ref[...] = jnp.maximum(o_ref[...] + b_ref[...].astype(jnp.float32), 0.0)


# --------------------------------------------------------------------------- module
class LinearReLU:
    """Pallas-TPU equivalent of the PyTorch `Layer` module: y = relu(x @ W^T + b).

    The (K, N)-layout, 128-padded weight and the padded bias row are built ONCE here
    (mirroring nn.Module parameter init), so repeated forward calls do not pay the
    transpose / pad HBM traffic.
    """

    def __init__(self, w, b, *, weight_dtype=None,
                 tm_target=512, tn_target=512, tk_target=1024,
                 small_path_max_bytes=1 << 20,          # ~1 MiB f32 -> single-shot path
                 k_collapse_budget_bytes=24 << 20):      # conservative for v7x VMEM
        N, K = w.shape
        assert b.shape == (N,), "bias shape mismatch"
        self.N, self.K = N, K

        # Kept un-modified for the tiny-shape single-shot path (no wrapper ops at all).
        self.w = w                                        # (N, K) PyTorch layout
        self.b_row = b.reshape(1, N)

        # One-time prep for the tiled path: (Kp, Np) MXU-friendly RHS + padded bias.
        self.Kp = _round_up(K, 128)
        self.Np = _round_up(N, 128)
        wd = w.dtype if weight_dtype is None else weight_dtype
        self.w_kn = (jnp.zeros((self.Kp, self.Np), wd)
                     .at[:K, :N].set(w.T.astype(wd)))
        self.b_p = (jnp.zeros((1, self.Np), jnp.float32)
                    .at[0, :N].set(b.astype(jnp.float32)))

        self.tm_target = tm_target
        self.tn_target = tn_target
        self.tk_target = tk_target
        self.small_path_max_bytes = small_path_max_bytes
        self.k_collapse_budget_bytes = k_collapse_budget_bytes

    # -- public forward ------------------------------------------------------------
    def __call__(self, x, *, force_tiled=False):
        M, K = x.shape
        assert K == self.K, "input feature dim mismatch"
        total_bytes = 4 * (M * K + self.N * K + self.N + M * self.N)
        if (not force_tiled) and total_bytes <= self.small_path_max_bytes:
            return self._small_call(x)
        return self._tiled_call(x)

    # -- tiny shapes: one un-gridded kernel, full-array blocks, zero wrapper ops ----
    def _small_call(self, x):
        M, K = x.shape
        N = self.N
        return pl.pallas_call(
            _small_linear_relu_kernel,
            out_shape=jax.ShapeDtypeStruct((M, N), x.dtype),
            grid=(1,),
            in_specs=[
                pl.BlockSpec((M, K), lambda i: (0, 0)),   # full blocks (== array dims)
                pl.BlockSpec((N, K), lambda i: (0, 0)),
                pl.BlockSpec((1, N), lambda i: (0, 0)),
            ],
            out_specs=pl.BlockSpec((M, N), lambda i: (0, 0)),
        )(x, self.w, self.b_row)

    # -- general shapes: tiled MXU kernel ------------------------------------------
    def _tiled_call(self, x):
        M, K = x.shape
        N, Kp, Np = self.N, self.Kp, self.Np
        # The K-grid variant accumulates directly in the f32 output block.
        assert x.dtype == jnp.float32, "tiled path assumes an f32 activation/output"
        Mp = _round_up(M, 8)

        # Pad x only when actually needed (K/N padding is baked into the prepared params).
        if (Mp, Kp) != (M, K):
            x_p = jnp.zeros((Mp, Kp), x.dtype).at[:M, :K].set(x)
        else:
            x_p = x

        # Tile sizes are exact divisors of the padded dims -> no over-padding / waste.
        tm = _largest_tile(Mp, self.tm_target, 8)
        tn = _largest_tile(Np, self.tn_target, 128)
        # v7x megacore: keep >= 2 blocks along a parallel axis when the batch is tiny.
        if Mp // tm == 1 and Np // tn == 1 and Np >= 256:
            tn = _largest_tile(Np, Np // 2, 128)

        wbytes = self.w_kn.dtype.itemsize
        # Collapse the K grid axis whenever the full-K (double-buffered) working set
        # fits a conservative budget: each output tile is then written exactly once.
        collapsed_ws = (2 * tm * Kp * 4 + 2 * Kp * tn * wbytes
                        + 2 * tm * tn * 4 + 2 * tn * 4)
        collapse_k = collapsed_ws <= self.k_collapse_budget_bytes

        if collapse_k:
            grid = (Mp // tm, Np // tn)
            kernel = _linear_relu_kernel_k_collapsed
            in_specs = [
                pl.BlockSpec((tm, Kp), lambda i, j: (i, 0)),
                pl.BlockSpec((Kp, tn), lambda i, j: (0, j)),
                pl.BlockSpec((1, tn), lambda i, j: (0, j)),
            ]
            out_specs = pl.BlockSpec((tm, tn), lambda i, j: (i, j))
            semantics = ("parallel", "parallel")
            working_set = collapsed_ws
            x_reads = 1                      # x block index constant over the j sweep
        else:
            tk = _largest_tile(Kp, self.tk_target, 128)
            grid = (Mp // tm, Np // tn, Kp // tk)
            kernel = _linear_relu_kernel_k_grid
            in_specs = [
                pl.BlockSpec((tm, tk), lambda i, j, k: (i, k)),
                # Weight is the dominant DMA stream: triple-buffer it.
                pl.BlockSpec((tk, tn), lambda i, j, k: (k, j),
                             pipeline_mode=pl.Buffered(3)),
                pl.BlockSpec((1, tn), lambda i, j, k: (0, j)),
            ]
            out_specs = pl.BlockSpec((tm, tn), lambda i, j, k: (i, j))
            semantics = ("parallel", "parallel", "arbitrary")
            working_set = (2 * tm * tk * 4 + 3 * tk * tn * wbytes
                           + 2 * tm * tn * 4 + 2 * tn * 4)
            x_reads = Np // tn

        # Headroom over the working set, capped at 48 MiB (safe on v7x's 64 MiB VMEM,
        # loose-but-harmless on v5e/v6e's 128 MiB).
        vmem_limit = int(min(48 * 1024 * 1024,
                             max(16 * 1024 * 1024, working_set * 3 // 2)))

        cost = pl.CostEstimate(
            flops=2 * M * N * K,
            transcendentals=0,
            bytes_accessed=int(4 * Mp * Kp * x_reads                 # x re-reads
                               + wbytes * Kp * Np * (Mp // tm)       # w re-reads
                               + 4 * Np + 4 * Mp * Np),
        )

        out_p = pl.pallas_call(
            kernel,
            out_shape=jax.ShapeDtypeStruct((Mp, Np), jnp.float32),
            grid=grid,
            in_specs=in_specs,
            out_specs=out_specs,
            compiler_params=pltpu.CompilerParams(
                dimension_semantics=semantics,
                vmem_limit_bytes=vmem_limit,
            ),
            cost_estimate=cost,
        )(x_p, self.w_kn, self.b_p)

        if (Mp, Np) != (M, N):
            out_p = out_p[:M, :N]            # only when padding was actually added
        return out_p


def linear_relu(x, w, b, **kwargs):
    """Convenience one-shot wrapper. For repeated calls, build LinearReLU once."""
    return LinearReLU(w, b)(x, **kwargs)


def linear_relu_ref(x, w, b):
    return jnp.maximum(x @ w.T + b, 0.0)


# --------------------------------------------------------------------------- main
if __name__ == "__main__":
    # ---- Module-sized check: batch=8, input_size=32, output_size=32 (small path) ----
    batch, input_size, output_size = 8, 32, 32
    kx, kw, kb = jax.random.split(jax.random.PRNGKey(0), 3)
    bound = 1.0 / jnp.sqrt(jnp.float32(input_size))
    x = jax.random.normal(kx, (batch, input_size), dtype=jnp.float32)
    # Deterministic params mimicking nn.Linear's uniform(-1/sqrt(K), 1/sqrt(K)) init.
    w = jax.random.uniform(kw, (output_size, input_size),
                           minval=-bound, maxval=bound, dtype=jnp.float32)
    b = jax.random.uniform(kb, (output_size,),
                           minval=-bound, maxval=bound, dtype=jnp.float32)

    layer = LinearReLU(w, b)
    y = jax.block_until_ready(layer(x))
    y_ref = linear_relu_ref(x, w, b)
    assert y.shape == (batch, output_size)
    assert jnp.allclose(y, y_ref, atol=1e-5, rtol=1e-5), "small-path mismatch"

    # ---- Tiled-path check (unaligned dims -> padding, collapsed-K kernel) ----------
    M2, K2, N2 = 264, 200, 160
    k1, k2, k3 = jax.random.split(jax.random.PRNGKey(1), 3)
    x2 = jax.random.normal(k1, (M2, K2), dtype=jnp.float32)
    w2 = jax.random.normal(k2, (N2, K2), dtype=jnp.float32) * 0.05
    b2 = jax.random.normal(k3, (N2,), dtype=jnp.float32)
    layer2 = LinearReLU(w2, b2)
    y2 = jax.block_until_ready(layer2(x2, force_tiled=True))
    assert jnp.allclose(y2, linear_relu_ref(x2, w2, b2), atol=1e-4, rtol=1e-4), \
        "tiled (collapsed-K) mismatch"

    # ---- Tiled-path check with the K grid axis kept (accumulate-in-output kernel) --
    layer3 = LinearReLU(w2, b2, tk_target=128, k_collapse_budget_bytes=0)
    y3 = jax.block_until_ready(layer3(x2, force_tiled=True))
    assert jnp.allclose(y3, linear_relu_ref(x2, w2, b2), atol=1e-4, rtol=1e-4), \
        "tiled (K-grid) mismatch"

    print("KERNEL_OK")
</pallas_src>

<mosaic_0001>
module attributes {stable_mosaic.version = 11 : i64} {
  func.func @_small_linear_relu_kernel(%arg0: i32, %arg1: memref<8x32xf32, #tpu.memory_space<vmem>>, %arg2: memref<32x32xf32, #tpu.memory_space<vmem>>, %arg3: memref<1x32xf32, #tpu.memory_space<vmem>>, %arg4: memref<8x32xf32, #tpu.memory_space<vmem>>) attributes {dimension_semantics = [#tpu.dimension_semantics<arbitrary>], iteration_bounds = array<i64: 1>, scalar_prefetch = 0 : i64, scratch_operands = 0 : i64, tpu.core_type = #tpu.core_type<tc>, window_params = [{pipeline_mode = #tpu.pipeline_mode<synchronous>, transform_indices = @transform_0, window_bounds = array<i64: 8, 32>}, {pipeline_mode = #tpu.pipeline_mode<synchronous>, transform_indices = @transform_1, window_bounds = array<i64: 32, 32>}, {pipeline_mode = #tpu.pipeline_mode<synchronous>, transform_indices = @transform_2, window_bounds = array<i64: 1, 32>}, {pipeline_mode = #tpu.pipeline_mode<synchronous>, transform_indices = @transform_3, window_bounds = array<i64: 8, 32>}]} {
    %c0 = arith.constant 0 : index
    %c0_0 = arith.constant 0 : index
    %0 = vector.load %arg1[%c0, %c0_0] : memref<8x32xf32, #tpu.memory_space<vmem>>, vector<8x32xf32>
    %c0_1 = arith.constant 0 : index
    %c0_2 = arith.constant 0 : index
    %1 = vector.load %arg2[%c0_1, %c0_2] : memref<32x32xf32, #tpu.memory_space<vmem>>, vector<32x32xf32>
    %cst = arith.constant dense<0.000000e+00> : vector<8x32xf32>
    %2 = tpu.matmul %0, %1, %cst {dimension_numbers = #tpu.dot_dimension_numbers<[1], [1], [0], [0], [0, 0, 1, 0], [], []>} : vector<8x32xf32>, vector<32x32xf32>, vector<8x32xf32> -> vector<8x32xf32>
    %c0_3 = arith.constant 0 : index
    %c0_4 = arith.constant 0 : index
    %3 = vector.load %arg3[%c0_3, %c0_4] : memref<1x32xf32, #tpu.memory_space<vmem>>, vector<1x32xf32>
    %4 = vector.broadcast %3 : vector<1x32xf32> to vector<8x32xf32>
    %5 = arith.addf %2, %4 : vector<8x32xf32>
    %cst_5 = arith.constant 0.000000e+00 : f32
    %6 = vector.broadcast %cst_5 : f32 to vector<8x32xf32>
    %7 = arith.maximumf %5, %6 : vector<8x32xf32>
    %c0_6 = arith.constant 0 : index
    %c0_7 = arith.constant 0 : index
    %8 = vector.load %arg4[%c0_6, %c0_7] : memref<8x32xf32, #tpu.memory_space<vmem>>, vector<8x32xf32>
    tpu.vector_store %arg4[%c0_6, %c0_7], %7 {strides = array<i32>} : memref<8x32xf32, #tpu.memory_space<vmem>>, vector<8x32xf32>,
    return
  }
  func.func @transform_0(%arg0: i32) -> (i32, i32) {
    %c0_i32 = arith.constant 0 : i32
    %c0_i32_0 = arith.constant 0 : i32
    %c0_i32_1 = arith.constant 0 : i32
    return %c0_i32, %c0_i32_0 : i32, i32
  }
  func.func @transform_1(%arg0: i32) -> (i32, i32) {
    %c0_i32 = arith.constant 0 : i32
    %c0_i32_0 = arith.constant 0 : i32
    %c0_i32_1 = arith.constant 0 : i32
    return %c0_i32, %c0_i32_0 : i32, i32
  }
  func.func @transform_2(%arg0: i32) -> (i32, i32) {
    %c0_i32 = arith.constant 0 : i32
    %c0_i32_0 = arith.constant 0 : i32
    %c0_i32_1 = arith.constant 0 : i32
    return %c0_i32, %c0_i32_0 : i32, i32
  }
  func.func @transform_3(%arg0: i32) -> (i32, i32) {
    %c0_i32 = arith.constant 0 : i32
    %c0_i32_0 = arith.constant 0 : i32
    %c0_i32_1 = arith.constant 0 : i32
    return %c0_i32, %c0_i32_0 : i32, i32
  }
}

</mosaic_0001>

<bundles_post_ra>
// kernel: tpu_custom_call.1
= control target key start
LH: loop header
LB: loop body
LE: loop exit
PB: predicated region body
PF: predicated region fallthrough
CT: control target
= control target key end

     0   :  { %8 = vsyncpa [#allocation3], 0  ;;  %s242_s0 = inlined_call_operand.hbm [shape: f32[8,32], index: 0, kind: input, shape index: {}]   ;;  %s243_s1 = inlined_call_operand.hbm [shape: f32[32,32], index: 1, kind: input, shape index: {}]   ;;  %s244_s2 = inlined_call_operand.vmem [shape: f32[1,32], index: 2, kind: input, shape index: {}]   ;;  %s245_s3 = inlined_call_operand.hbm [shape: f32[8,32], index: 3, kind: output, shape index: {}]  }
   0x1   :  { %9 = vsyncpa [#allocation6], 0 }
   0x2   :  { %10 = vsyncpa [#allocation4], 0  ;;  %s16_s14 = sshll.u32 %s242_s0, 4  ;;  %s199_s15 = smov [#allocation2]   ;;  %s17_s14 = int_to_ptr.hbm [resolvable:$true] %s16_s14 }
   0x3   :  { %s18_s16 = sshll.u32 %s199_s15, 4  ;;  %s26_s19 = sshll.u32 %s243_s1, 4  ;;  %s19_s16 = int_to_ptr.vmem [resolvable:$true] %s18_s16  ;;  %s27_s19 = int_to_ptr.hbm [resolvable:$true] %s26_s19 }
   0x4   :  { %21 = dma.hbm_to_vmem [thread:$0]  %s17_s14, 128, %s19_s16, [#allocation3]  }
   0x5   :  { %s200_s20 = smov [#allocation5]   ;;  %s201_s22 = smov 128  }
   0x6   :  { %s28_s21 = sshll.u32 %s200_s20, 4  ;;  %s202_s23 = smov 8   ;;  %s29_s21 = int_to_ptr.vmem [resolvable:$true] %s28_s21 }
   0x7   :  { %34 = dma.hbm_to_vmem [thread:$0]  %s27_s19, 512, %s29_s21, [#allocation6], %s201_s22, %s201_s22, %s202_s23  }
   0x8   :  { %193 = dma.done.wait [#allocation3], 128  }
   0x9   :  { %194 = vsyncadd [#allocation3], 4294967168 }
   0xa   :  { %195 = dma.done.wait [#allocation6], 512  }
   0xb   :  { %196 = vsyncadd [#allocation6], 4294966784  ;;  %vm54_vm0 = vcmask 261120   ;;  %v49_v0 = vld [vmem:[#allocation5 + $0x18] sm:$0xff]  ;;  %v48_v1 = vld [vmem:[#allocation5 + $0x10] sm:$0xff]  ;;  %s203_s24 = smov [#allocation7]  }
   0xc   :  { %110 = vmatpush.xpose.msk.msra.mxu0 %vm54_vm0, %v49_v0  ;;  %v47_v2 = vld [vmem:[#allocation5 + $0x8] sm:$0xff]  ;;  %v46_v3 = vld [vmem:[#allocation5] sm:$0xff]  ;;  %v45_v4 = vld [vmem:[#allocation2] sm:$0xff]  ;;  %s97_s25 = sshll.u32 %s203_s24, 4  ;;  %s99_s28 = sshll.u32 %s245_s3, 4  ;;  %s98_s25 = int_to_ptr.vmem [resolvable:$true] %s97_s25  ;;  %s100_s28 = int_to_ptr.hbm [resolvable:$true] %s99_s28 }
   0xd   :  { %v120_v5 = vld [vmem:[%s244_s2] ss:$0 sm:$0xff] }
  0x10   :  { %111 = vmatpush.xpose.msk.msra.mxu0 %vm54_vm0, %v48_v1 }
  0x14   :  { %112 = vmatpush.xpose.msk.msra.mxu0 %vm54_vm0, %v47_v2 }
  0x18   :  { %113 = vmatpush.xpose.msk.msra.mxu0 %vm54_vm0, %v46_v3 }
  0x1b   :  { %114 = vmatmul.msk.f32.vlgmr.msra.gmra.mxu0 %vm54_vm0, %v45_v4 }
  0x98   :  { %v87_v6 = vpop.f32.mrf.mxu0 }
  0x99   :  { %v88_v7 = vadd.f32 %v120_v5, %v87_v6 }
  0x9b   :  { %v90_v8 = vmax.f32 %v88_v7, 0.0 }
  0x9d   :  { %91 = vst.msk [vmem:[#allocation7] sm:$0xff] %vm54_vm0, %v90_v8 }
  0x9e   :  { %102 = dma.vmem_to_hbm [thread:$0]  %s98_s25, 128, %s100_s28, [#allocation4]  }
  0x9f   :  { %197 = dma.done.wait [#allocation4], 128  }
  0xa0   :  { %198 = vsyncadd [#allocation4], 4294967168 }
  0xa1   :  { %107 = vsyncpa [#allocation3], 1 }
  0xa2   :  { %108 = vsyncpa [#allocation6], 1 }
  0xa3   :  { %109 = vsyncpa [#allocation4], 1 }

</bundles_post_ra>
